<compile_context>
chip_gen: v7x
topology: tpu7x:2x2x1
jax: 0.10.0
libtpu: 0.0.40
codegen_flags: <defaults>
</compile_context>

<pallas_src>
import functools

import jax
import jax.numpy as jnp
from jax.experimental import pallas as pl
from jax.experimental.pallas import tpu as pltpu


def _linear_kernel(x_ref, w_ref, b_ref, o_ref, *, tk, d_total, num_k, mask_last_k):
    """One (batch-tile, k-tile) step of y = x @ w^T + b with out_features == 1.

    x_ref: (TB, TK)   VMEM, input's native dtype (streamed from HBM).
    w_ref: (1, D_pad) VMEM f32 — full weight, resident (constant index_map).
    b_ref: (1, 1)     SMEM f32 — bias scalar.
    o_ref: (TB, 1)    VMEM f32 — resident accumulator across the k axis.
    """
    k = pl.program_id(1)

    if num_k == 1:
        w = w_ref[...]                                    # (1, D)
    else:
        start = pl.multiple_of(k * tk, 128)               # tk % 128 == 0 here
        w = w_ref[:, pl.ds(start, tk)]                    # (1, TK)

    x = x_ref[...].astype(jnp.float32)                    # upcast after load
    prod = x * w                                          # VPU elementwise

    if mask_last_k:
        # The final K block is partially out-of-bounds (x is NOT padded in
        # HBM): zero the garbage columns so NaN/Inf garbage can't leak in.
        col = jax.lax.broadcasted_iota(jnp.int32, prod.shape, 1) + k * tk
        prod = jnp.where(col < d_total, prod, 0.0)

    partial = jnp.sum(prod, axis=-1, keepdims=True)       # lane reduce (XLU)

    @pl.when(k == 0)
    def _():
        o_ref[...] = partial + b_ref[0, 0]

    @pl.when(k != 0)
    def _():
        o_ref[...] = o_ref[...] + partial


@functools.partial(jax.jit, static_argnames=("tb_max", "tk_max"))
def linear_classifier_forward(inp, weight, bias, *, tb_max=262144, tk_max=2048):
    """Pallas equivalent of LinearClassifier.forward.

    inp:    (B, D) float32/bfloat16
    weight: (1, D) (nn.Linear weight layout: (out_features, in_features))
    bias:   (1,)
    returns: squeezed output (matches torch.squeeze semantics).
    """
    B, D = inp.shape
    out_dtype = jnp.result_type(inp.dtype, weight.dtype)

    # Weight / bias are tiny — fix their layout/dtype in the wrapper.  The big
    # input `inp` is streamed in its native dtype (no HBM astype / pad copy).
    w = weight.reshape(1, D).astype(jnp.float32)
    b2d = bias.reshape(1, 1).astype(jnp.float32)

    # ---- K (feature) tiling -------------------------------------------------
    if D <= tk_max:
        TK, nk, d_pad = D, 1, D
        mask_last_k = False
    else:
        TK = tk_max                                  # multiple of 128
        nk = pl.cdiv(D, TK)
        d_pad = nk * TK
        mask_last_k = d_pad != D
        if mask_last_k:
            # Pad only the tiny weight; x's last K block is masked in-kernel.
            w = jnp.pad(w, ((0, 0), (0, d_pad - D)))

    # ---- Batch tiling: biggest multiple-of-8 TB with a ~16 MiB x tile -------
    x_itemsize = jnp.dtype(inp.dtype).itemsize
    per_buffer_budget = 16 * 1024 * 1024             # x double-buffered -> ~32 MiB
    tb_fit = max(8, (per_buffer_budget // (TK * x_itemsize)) // 8 * 8)
    tb_cap = max(8, min(tb_max, tb_fit) // 8 * 8)

    if B > tb_cap:
        TB = tb_cap
    else:
        # Whole batch fits in one tile: split into >= 2 balanced blocks so the
        # "parallel" axis can shard across v7x's 2 TensorCores, but only when
        # the resulting tile is still a legal multiple of 8.
        half = (-(-B // 2) + 7) // 8 * 8
        TB = half if (8 <= half < B) else B
    nb = pl.cdiv(B, TB)

    kernel = functools.partial(
        _linear_kernel, tk=TK, d_total=D, num_k=nk, mask_last_k=mask_last_k)

    out = pl.pallas_call(
        kernel,
        out_shape=jax.ShapeDtypeStruct((B, 1), jnp.float32),
        grid_spec=pl.GridSpec(
            grid=(nb, nk),
            in_specs=[
                pl.BlockSpec((TB, TK), lambda i, k: (i, k)),        # x: streamed
                pl.BlockSpec((1, d_pad), lambda i, k: (0, 0)),      # w: resident
                pl.BlockSpec(memory_space=pltpu.MemorySpace.SMEM),  # bias scalar
            ],
            out_specs=pl.BlockSpec((TB, 1), lambda i, k: (i, 0)),
        ),
        compiler_params=pltpu.CompilerParams(
            dimension_semantics=("parallel", "arbitrary"),
            vmem_limit_bytes=48 * 1024 * 1024,        # safe on v5e/v6e/v7x
        ),
        cost_estimate=pl.CostEstimate(
            flops=2 * B * D,
            transcendentals=0,
            bytes_accessed=B * D * x_itemsize + d_pad * 4 + B * 4,
        ),
    )(inp, w, b2d)

    return jnp.squeeze(out).astype(out_dtype)


if __name__ == "__main__":
    key = jax.random.PRNGKey(0)
    k_x, k_w, k_b = jax.random.split(key, 3)

    batch = 8
    input_dim = 32

    # Deterministic inputs / params (nn.Linear default init: U(-1/sqrt(D), 1/sqrt(D)))
    x = jax.random.normal(k_x, (batch, input_dim), dtype=jnp.float32)
    bound = 1.0 / jnp.sqrt(jnp.float32(input_dim))
    weight = jax.random.uniform(k_w, (1, input_dim), dtype=jnp.float32,
                                minval=-bound, maxval=bound)
    bias = jax.random.uniform(k_b, (1,), dtype=jnp.float32,
                              minval=-bound, maxval=bound)

    out = jax.block_until_ready(linear_classifier_forward(x, weight, bias))

    # Sanity check against plain-JAX reference
    ref = jnp.squeeze(x @ weight.T + bias)
    assert out.shape == (batch,), out.shape
    assert jnp.allclose(out, ref, atol=1e-5), (out, ref)

    print("KERNEL_OK")
</pallas_src>

<mosaic_0001>
module attributes {stable_mosaic.version = 11 : i64} {
  func.func @_linear_kernel(%arg0: i32, %arg1: i32, %arg2: memref<8x32xf32, #tpu.memory_space<vmem>>, %arg3: memref<1x32xf32, #tpu.memory_space<vmem>>, %arg4: memref<1x1xf32, #tpu.memory_space<smem>>, %arg5: memref<8x1xf32, #tpu.memory_space<vmem>>) attributes {dimension_semantics = [#tpu.dimension_semantics<parallel>, #tpu.dimension_semantics<arbitrary>], iteration_bounds = array<i64: 1, 1>, scalar_prefetch = 0 : i64, scratch_operands = 0 : i64, tpu.core_type = #tpu.core_type<tc>, window_params = [{transform_indices = @transform_0, window_bounds = array<i64: 8, 32>}, {pipeline_mode = #tpu.pipeline_mode<synchronous>, transform_indices = @transform_1, window_bounds = array<i64: 1, 32>}, {transform_indices = @transform_2, window_bounds = array<i64: 1, 1>}, {transform_indices = @transform_3, window_bounds = array<i64: 8, 1>}]} {
    %c0 = arith.constant 0 : index
    %c0_0 = arith.constant 0 : index
    %0 = vector.load %arg3[%c0, %c0_0] : memref<1x32xf32, #tpu.memory_space<vmem>>, vector<1x32xf32>
    %c0_1 = arith.constant 0 : index
    %c0_2 = arith.constant 0 : index
    %1 = vector.load %arg2[%c0_1, %c0_2] : memref<8x32xf32, #tpu.memory_space<vmem>>, vector<8x32xf32>
    %2 = vector.broadcast %0 : vector<1x32xf32> to vector<8x32xf32>
    %3 = arith.mulf %1, %2 : vector<8x32xf32>
    %cst = arith.constant dense<0.000000e+00> : vector<8xf32>
    %4 = vector.multi_reduction <add>, %3, %cst [1] : vector<8x32xf32> to vector<8xf32>
    %5 = vector.shape_cast %4 : vector<8xf32> to vector<8x1xf32>
    %c0_i32 = arith.constant 0 : i32
    %6 = arith.cmpi eq, %arg1, %c0_i32 : i32
    %7 = arith.extui %6 : i1 to i32
    %c0_i32_3 = arith.constant 0 : i32
    %8 = arith.cmpi ne, %7, %c0_i32_3 : i32
    scf.if %8 {
      %c0_6 = arith.constant 0 : index
      %c0_7 = arith.constant 0 : index
      %12 = memref.load %arg4[%c0_6, %c0_7] : memref<1x1xf32, #tpu.memory_space<smem>>
      %13 = vector.broadcast %12 : f32 to vector<8x1xf32>
      %14 = arith.addf %5, %13 : vector<8x1xf32>
      %c0_8 = arith.constant 0 : index
      %c0_9 = arith.constant 0 : index
      %15 = vector.load %arg5[%c0_8, %c0_9] : memref<8x1xf32, #tpu.memory_space<vmem>>, vector<8x1xf32>
      tpu.vector_store %arg5[%c0_8, %c0_9], %14 {strides = array<i32>} : memref<8x1xf32, #tpu.memory_space<vmem>>, vector<8x1xf32>,
    } else {
    }
    %c0_i32_4 = arith.constant 0 : i32
    %9 = arith.cmpi ne, %arg1, %c0_i32_4 : i32
    %10 = arith.extui %9 : i1 to i32
    %c0_i32_5 = arith.constant 0 : i32
    %11 = arith.cmpi ne, %10, %c0_i32_5 : i32
    scf.if %11 {
      %c0_6 = arith.constant 0 : index
      %c0_7 = arith.constant 0 : index
      %12 = vector.load %arg5[%c0_6, %c0_7] : memref<8x1xf32, #tpu.memory_space<vmem>>, vector<8x1xf32>
      %13 = arith.addf %12, %5 : vector<8x1xf32>
      %c0_8 = arith.constant 0 : index
      %c0_9 = arith.constant 0 : index
      %14 = vector.load %arg5[%c0_8, %c0_9] : memref<8x1xf32, #tpu.memory_space<vmem>>, vector<8x1xf32>
      tpu.vector_store %arg5[%c0_8, %c0_9], %13 {strides = array<i32>} : memref<8x1xf32, #tpu.memory_space<vmem>>, vector<8x1xf32>,
    } else {
    }
    return
  }
  func.func @transform_0(%arg0: i32, %arg1: i32) -> (i32, i32) {
    %c0_i32 = arith.constant 0 : i32
    return %arg0, %arg1 : i32, i32
  }
  func.func @transform_1(%arg0: i32, %arg1: i32) -> (i32, i32) {
    %c0_i32 = arith.constant 0 : i32
    %c0_i32_0 = arith.constant 0 : i32
    %c0_i32_1 = arith.constant 0 : i32
    return %c0_i32, %c0_i32_0 : i32, i32
  }
  func.func @transform_2(%arg0: i32, %arg1: i32) -> (i32, i32) {
    %c0_i32 = arith.constant 0 : i32
    %c0_i32_0 = arith.constant 0 : i32
    %c0_i32_1 = arith.constant 0 : i32
    return %c0_i32, %c0_i32_0 : i32, i32
  }
  func.func @transform_3(%arg0: i32, %arg1: i32) -> (i32, i32) {
    %c0_i32 = arith.constant 0 : i32
    %c0_i32_0 = arith.constant 0 : i32
    return %arg0, %c0_i32 : i32, i32
  }
}

</mosaic_0001>

<bundles_post_ra>
// kernel: linear_classifier_forward.1
= control target key start
LH: loop header
LB: loop body
LE: loop exit
PB: predicated region body
PF: predicated region fallthrough
CT: control target
= control target key end

     0   :  { %9 = vsyncpa [#allocation4], 0  ;;  %s88_s12 = smov [#allocation3]   ;;  %s130_s0 = inlined_call_operand.hbm [shape: f32[8,32], index: 0, kind: input, shape index: {}]   ;;  %s131_s1 = inlined_call_operand.vmem [shape: f32[1,32], index: 1, kind: input, shape index: {}]   ;;  %s132_s2 = inlined_call_operand.<no memory space> [shape: f32[1,1], index: 2, kind: input, shape index: {}]   ;;  %s133_s3 = inlined_call_operand.vmem [shape: f32[8,1], index: 3, kind: output, shape index: {}]  }
   0x1   :  { %s16_s13 = sshll.u32 %s88_s12, 4  ;;  %s64_s16 = scalar_lea.hbm %s130_s0, 128  ;;  %s17_s13 = int_to_ptr.vmem [resolvable:$true] %s16_s13 }
   0x2   :  { %p65_p0 = scmp.ne.s32.totalorder %s130_s0, %s64_s16  ;;  %p68_p1 = scmp.lt.u32.totalorder %s64_s16, %s130_s0 }
   0x4   :  { %p70_p2 = pnand %p68_p1, %p65_p0 }
   0x6   :  { %73 = shalt.err (!%p70_p2)
}
   0x7   :  { %s74_s21 = scalar_lea.vmem %s17_s13, 128  ;;  %p79_p4 = scmp.lt.s32.totalorder %s17_s13, %s17_s13 }
   0x8   :  { %p75_p3 = scmp.ne.s32.totalorder %s17_s13, %s74_s21  ;;  %p80_p5 = scmp.lt.s32.totalorder %s74_s21, %s74_s21 }
   0xa   :  { %p81_p6 = por %p80_p5, %p79_p4 }
   0xc   :  { %p82_p7 = pnand %p81_p6, %p75_p3 }
   0xe   :  { %85 = shalt.err (!%p82_p7)
}
   0xf   :  { %19 = dma.hbm_to_vmem [thread:$0]  %s130_s0, 128, %s17_s13, [#allocation4]  }
  0x10   :  { %86 = dma.done.wait [#allocation4], 128  }
  0x11   :  { %87 = vsyncadd [#allocation4], 4294967168  ;;  %v62_v0 = vld [vmem:[%s131_s1] ss:$0 sm:$0xff]  ;;  %vm36_vm0 = vcmask 261120   ;;  %v45_v4 = vstv %s132_s2  ;;  %vm47_vm1 = vcmask 7168  }
  0x12   :  { %v28_v1 = vld [vmem:[#allocation3] sm:$0xff] }
  0x13   :  { %v35_v2 = vmul.f32 %v62_v0, %v28_v1 }
  0x15   :  { %v37_v3 = vsel %vm36_vm0, %v35_v2, 0.0 }
  0x16   :  { %38 = vadd.xlane.f32.xlu0 %v37_v3 }
  0xa3   :  { %v39_v5 = vpop.xlane.xlu0 %38 }
  0xa4   :  { %v46_v6 = vadd.f32 %v45_v4, %v39_v5 }
  0xa6   :  { %48 = vst.msk [vmem:[%s133_s3] sm:$0xff] %vm47_vm1, %v46_v6 }
  0xa7   :  { %61 = vsyncpa [#allocation4], 1 }

</bundles_post_ra>
